<compile_context>
chip_gen: v7x
topology: tpu7x:2x2x1
jax: 0.10.0
libtpu: 0.0.40
codegen_flags: <defaults>
</compile_context>

<pallas_src>
import functools

import jax
import jax.numpy as jnp
from jax import lax
from jax.experimental import pallas as pl
from jax.experimental.pallas import tpu as pltpu


def _round_up(x, m):
    return (x + m - 1) // m * m


def _cdiv(a, b):
    return -(-a // b)


# ---------------------------------------------------------------------------
# Probe: is pipeline_mode=pl.Buffered(1) available / lowerable on this JAX?
# ---------------------------------------------------------------------------
_BUFFERED1 = None


def _probe_kernel(x_ref, o_ref):
    o_ref[...] = x_ref[...]


def _buffered1_supported():
    global _BUFFERED1
    if _BUFFERED1 is None:
        try:
            spec = pl.BlockSpec((8, 128), lambda i: (0, 0),
                                pipeline_mode=pl.Buffered(1))
            out = pl.pallas_call(
                _probe_kernel,
                out_shape=jax.ShapeDtypeStruct((8, 128), jnp.float32),
                grid=(1,),
                in_specs=[spec],
                out_specs=pl.BlockSpec((8, 128), lambda i: (0, 0)),
            )(jnp.zeros((8, 128), jnp.float32))
            jax.block_until_ready(out)
            _BUFFERED1 = True
        except Exception:
            _BUFFERED1 = False
    return _BUFFERED1


def _vmem_budget_bytes():
    try:
        cap = int(pltpu.get_tpu_info().vmem_capacity_bytes)
    except Exception:
        cap = 64 * 1024 * 1024  # conservative (v7x-sized) default
    return max(32 * 1024 * 1024, min(cap * 3 // 4, 96 * 1024 * 1024))


def _spec(shape, index_map, single=False):
    if single:
        return pl.BlockSpec(shape, index_map, pipeline_mode=pl.Buffered(1))
    return pl.BlockSpec(shape, index_map)


# ---------------------------------------------------------------------------
# Pass 1: fc1 -> ReLU -> (dropout p=0) -> fc2 -> ReLU, plus BN partial stats.
# Grid = (row_tiles "parallel", hidden_chunks "arbitrary").
# ---------------------------------------------------------------------------
def _mlp_fwd_kernel(x_ref, w1_ref, b1_ref, w2_ref, b2_ref,
                    y_ref, s1_ref, s2_ref, acc_ref, h_ref, *, tm, n_valid):
    i = pl.program_id(0)
    k = pl.program_id(1)
    nk = pl.num_programs(1)

    @pl.when(k == 0)
    def _():
        acc_ref[...] = jnp.zeros_like(acc_ref)

    # fc1 chunk + ReLU: bf16 MXU inputs, f32 accumulate; bias/ReLU in f32.
    h = jnp.dot(x_ref[...].astype(jnp.bfloat16), w1_ref[...],
                preferred_element_type=jnp.float32) + b1_ref[...]
    # F.dropout(p=0.0, training=True) == identity.
    # TODO(synk): dropout with p > 0 would need pltpu.prng_seed / prng_random_bits.
    h_ref[...] = jnp.maximum(h, 0.0).astype(jnp.bfloat16)

    # fc2 partial accumulate over hidden chunks.
    acc_ref[...] += jnp.dot(h_ref[...], w2_ref[...],
                            preferred_element_type=jnp.float32)

    @pl.when(k == nk - 1)
    def _():
        y = jnp.maximum(acc_ref[...] + b2_ref[...], 0.0)
        y_ref[...] = y.astype(y_ref.dtype)

        last_i = pl.num_programs(0) - 1

        @pl.when(i < last_i)
        def _():
            s1_ref[...] = jnp.sum(y, axis=0, keepdims=True).reshape(1, 1, -1)
            s2_ref[...] = jnp.sum(y * y, axis=0, keepdims=True).reshape(1, 1, -1)

        @pl.when(i == last_i)
        def _():
            # Only the last row tile may contain padded rows; mask them out of
            # the batch statistics.
            row = lax.broadcasted_iota(jnp.int32, (tm, 1), 0) + i * tm
            mask = (row < n_valid).astype(jnp.float32)
            ym = y * mask
            s1_ref[...] = jnp.sum(ym, axis=0, keepdims=True).reshape(1, 1, -1)
            s2_ref[...] = jnp.sum(ym * y, axis=0, keepdims=True).reshape(1, 1, -1)


# ---------------------------------------------------------------------------
# Pass 2: BatchNorm folded into a single per-feature affine y*scale + shift.
# ---------------------------------------------------------------------------
def _bn_affine_kernel(y_ref, scale_ref, shift_ref, o_ref):
    o_ref[...] = (y_ref[...].astype(jnp.float32) * scale_ref[...]
                  + shift_ref[...]).astype(o_ref.dtype)


@functools.partial(jax.jit, static_argnames=("single_buf", "vmem_limit"))
def _mlp_forward_impl(inputs, w1, b1, w2, b2, gamma, beta, *,
                      single_buf, vmem_limit):
    B, L, input_dim = inputs.shape
    hidden_dim = w1.shape[1]
    output_dim = w2.shape[1]
    N = B * L
    out_dtype = inputs.dtype

    # Lane-dense padding of feature dims to multiples of 128.
    din_p = _round_up(input_dim, 128)
    h_p = _round_up(hidden_dim, 128)
    dout_p = _round_up(output_dim, 128)

    # Row tiling: TM multiple of 16 (bf16 packing); sized from the VMEM budget;
    # tile count forced even (when >1) so v7x megacore gets balanced work.
    target_tm = 1024 if vmem_limit >= 64 * 1024 * 1024 else 512
    num_tiles = max(1, _cdiv(N, target_tm))
    if num_tiles > 1 and num_tiles % 2 == 1:
        num_tiles += 1
    TM = _round_up(_cdiv(N, num_tiles), 16)
    n_p = num_tiles * TM

    # Skip the wrapper pad+cast copy of x when it is already aligned.
    no_copy_x = (N == n_p) and (input_dim == din_p)
    x_itemsize = jnp.dtype(inputs.dtype).itemsize if no_copy_x else 2

    # Hidden-dim chunking so both weight matrices (+ tiles) fit the VMEM budget.
    def fits(th, nk):
        wbuf = 1 if (nk == 1 and single_buf) else 2
        total = (TM * din_p * x_itemsize * 2            # x tile (double-buffered)
                 + din_p * th * 2 * wbuf                # W1 chunk
                 + th * dout_p * 2 * wbuf               # W2 chunk
                 + (th + dout_p) * 4 * 2                # biases
                 + TM * dout_p * 2 * 2                  # y tile (bf16)
                 + 2 * dout_p * 4 * 2                   # stats tiles
                 + TM * dout_p * 4                      # acc scratch
                 + TM * th * 2)                         # h scratch
        return total <= int(vmem_limit * 0.8)

    num_k = 1
    while True:
        th = _round_up(_cdiv(h_p, num_k), 128)
        if fits(th, num_k) or th <= 128:
            break
        num_k *= 2
    TH = _round_up(_cdiv(h_p, num_k), 128)
    h_pp = num_k * TH
    # TODO(synk): extremely large din_p/dout_p would additionally need tiling of
    #             the input/output feature axes; not required for this module.

    x2d = inputs.reshape(N, input_dim)
    if no_copy_x:
        x_in = x2d                                   # cast to bf16 inside kernel
    else:
        x_in = jnp.pad(x2d, ((0, n_p - N),
                             (0, din_p - input_dim))).astype(jnp.bfloat16)
    w1_p = jnp.pad(w1, ((0, din_p - input_dim),
                        (0, h_pp - hidden_dim))).astype(jnp.bfloat16)
    b1_p = jnp.pad(b1.reshape(1, -1).astype(jnp.float32),
                   ((0, 0), (0, h_pp - hidden_dim)))
    w2_p = jnp.pad(w2, ((0, h_pp - hidden_dim),
                        (0, dout_p - output_dim))).astype(jnp.bfloat16)
    b2_p = jnp.pad(b2.reshape(1, -1).astype(jnp.float32),
                   ((0, 0), (0, dout_p - output_dim)))
    gamma_p = jnp.pad(gamma.astype(jnp.float32), (0, dout_p - output_dim))
    beta_p = jnp.pad(beta.astype(jnp.float32), (0, dout_p - output_dim))

    w_single = single_buf and (num_k == 1)

    flops = 2 * n_p * (din_p * h_pp + h_pp * dout_p)
    w_bytes = (din_p * h_pp + h_pp * dout_p) * 2
    if num_k > 1:
        w_bytes *= num_tiles
    bytes_accessed = (n_p * din_p * x_itemsize + w_bytes
                      + (h_pp + dout_p) * 4
                      + n_p * dout_p * 2
                      + num_tiles * 2 * dout_p * 4)

    kernel1 = functools.partial(_mlp_fwd_kernel, tm=TM, n_valid=N)
    y_p, s1, s2 = pl.pallas_call(
        kernel1,
        out_shape=(jax.ShapeDtypeStruct((n_p, dout_p), jnp.bfloat16),
                   jax.ShapeDtypeStruct((num_tiles, 1, dout_p), jnp.float32),
                   jax.ShapeDtypeStruct((num_tiles, 1, dout_p), jnp.float32)),
        grid_spec=pltpu.PrefetchScalarGridSpec(
            num_scalar_prefetch=0,
            grid=(num_tiles, num_k),
            in_specs=[
                _spec((TM, din_p), lambda i, k: (i, 0)),                    # x
                _spec((din_p, TH), lambda i, k: (0, k), single=w_single),   # W1
                _spec((1, TH), lambda i, k: (0, k), single=w_single),       # b1
                _spec((TH, dout_p), lambda i, k: (k, 0), single=w_single),  # W2
                _spec((1, dout_p), lambda i, k: (0, 0), single=single_buf), # b2
            ],
            out_specs=(
                pl.BlockSpec((TM, dout_p), lambda i, k: (i, 0)),        # y
                pl.BlockSpec((1, 1, dout_p), lambda i, k: (i, 0, 0)),   # sum
                pl.BlockSpec((1, 1, dout_p), lambda i, k: (i, 0, 0)),   # sumsq
            ),
            scratch_shapes=[
                pltpu.VMEM((TM, dout_p), jnp.float32),   # fc2 accumulator
                pltpu.VMEM((TM, TH), jnp.bfloat16),      # relu(fc1) staging
            ],
        ),
        compiler_params=pltpu.CompilerParams(
            dimension_semantics=("parallel", "arbitrary"),
            vmem_limit_bytes=vmem_limit),
        cost_estimate=pl.CostEstimate(flops=flops, transcendentals=0,
                                      bytes_accessed=bytes_accessed),
    )(x_in, w1_p, b1_p, w2_p, b2_p)

    # PyTorch MLP.batch_norm skips normalization when the fc2 output has exactly
    # output_dim elements (single row) or is empty.
    if N <= 1:
        out2d = y_p[:N, :output_dim].astype(out_dtype)
        return out2d.reshape(B, L, output_dim)

    # Global training-mode BN statistics over all N rows (biased variance),
    # folded with gamma/beta into one affine per feature.
    s1_tot = jnp.sum(s1[:, 0, :], axis=0)
    s2_tot = jnp.sum(s2[:, 0, :], axis=0)
    mean = s1_tot / N
    var = jnp.maximum(s2_tot / N - mean * mean, 0.0)
    inv_std = lax.rsqrt(var + 1e-5)
    scale = (gamma_p * inv_std).reshape(1, dout_p)
    shift = (beta_p - mean * gamma_p * inv_std).reshape(1, dout_p)

    out_p = pl.pallas_call(
        _bn_affine_kernel,
        out_shape=jax.ShapeDtypeStruct((n_p, dout_p), out_dtype),
        grid_spec=pltpu.PrefetchScalarGridSpec(
            num_scalar_prefetch=0,
            grid=(num_tiles,),
            in_specs=[
                pl.BlockSpec((TM, dout_p), lambda i: (i, 0)),
                _spec((1, dout_p), lambda i: (0, 0), single=single_buf),
                _spec((1, dout_p), lambda i: (0, 0), single=single_buf),
            ],
            out_specs=pl.BlockSpec((TM, dout_p), lambda i: (i, 0)),
        ),
        compiler_params=pltpu.CompilerParams(
            dimension_semantics=("parallel",),
            vmem_limit_bytes=vmem_limit),
    )(y_p, scale, shift)

    return out_p[:N, :output_dim].reshape(B, L, output_dim)


def mlp_forward(inputs, w1, b1, w2, b2, gamma, beta):
    """inputs: (B, L, input_dim). Returns (B, L, output_dim)."""
    single_buf = _buffered1_supported()
    vmem_limit = _vmem_budget_bytes()
    return _mlp_forward_impl(inputs, w1, b1, w2, b2, gamma, beta,
                             single_buf=single_buf, vmem_limit=vmem_limit)


def init_mlp_params(key, input_dim, hidden_dim, output_dim):
    """Deterministic init matching the PyTorch module's init_weights()."""
    k1, k2 = jax.random.split(key, 2)

    def xavier_normal(k, fan_in, fan_out):
        std = (2.0 / (fan_in + fan_out)) ** 0.5
        # Stored as (in, out) so the kernel computes x @ W (== x @ W_pt.T).
        return std * jax.random.normal(k, (fan_in, fan_out), dtype=jnp.float32)

    w1 = xavier_normal(k1, input_dim, hidden_dim)
    b1 = jnp.full((hidden_dim,), 0.1, dtype=jnp.float32)
    w2 = xavier_normal(k2, hidden_dim, output_dim)
    b2 = jnp.full((output_dim,), 0.1, dtype=jnp.float32)
    gamma = jnp.ones((output_dim,), dtype=jnp.float32)   # BatchNorm1d weight
    beta = jnp.zeros((output_dim,), dtype=jnp.float32)   # BatchNorm1d bias
    return w1, b1, w2, b2, gamma, beta


if __name__ == "__main__":
    key = jax.random.PRNGKey(0)
    k_in, k_p = jax.random.split(key)

    B, L = 2, 8            # batch, sequence  -> N = 16 rows for batch norm
    input_dim, hidden_dim, output_dim = 16, 32, 16

    inputs = jax.random.normal(k_in, (B, L, input_dim), dtype=jnp.float32)
    params = init_mlp_params(k_p, input_dim, hidden_dim, output_dim)

    out = mlp_forward(inputs, *params)
    jax.block_until_ready(out)

    assert out.shape == (B, L, output_dim)
    assert bool(jnp.all(jnp.isfinite(out)))
    print("KERNEL_OK")
</pallas_src>

<mosaic_0001>
module attributes {stable_mosaic.version = 11 : i64} {
  func.func @_probe_kernel(%arg0: i32, %arg1: memref<8x128xf32, #tpu.memory_space<vmem>>, %arg2: memref<8x128xf32, #tpu.memory_space<vmem>>) attributes {dimension_semantics = [#tpu.dimension_semantics<arbitrary>], iteration_bounds = array<i64: 1>, scalar_prefetch = 0 : i64, scratch_operands = 0 : i64, tpu.core_type = #tpu.core_type<tc>, window_params = [{pipeline_mode = #tpu.pipeline_mode<synchronous>, transform_indices = @transform_0, window_bounds = array<i64: 8, 128>}, {pipeline_mode = #tpu.pipeline_mode<synchronous>, transform_indices = @transform_1, window_bounds = array<i64: 8, 128>}]} {
    %c0 = arith.constant 0 : index
    %c0_0 = arith.constant 0 : index
    %0 = vector.load %arg1[%c0, %c0_0] : memref<8x128xf32, #tpu.memory_space<vmem>>, vector<8x128xf32>
    %c0_1 = arith.constant 0 : index
    %c0_2 = arith.constant 0 : index
    %1 = vector.load %arg2[%c0_1, %c0_2] : memref<8x128xf32, #tpu.memory_space<vmem>>, vector<8x128xf32>
    tpu.vector_store %arg2[%c0_1, %c0_2], %0 {strides = array<i32>} : memref<8x128xf32, #tpu.memory_space<vmem>>, vector<8x128xf32>,
    return
  }
  func.func @transform_0(%arg0: i32) -> (i32, i32) {
    %c0_i32 = arith.constant 0 : i32
    %c0_i32_0 = arith.constant 0 : i32
    %c0_i32_1 = arith.constant 0 : i32
    return %c0_i32, %c0_i32_0 : i32, i32
  }
  func.func @transform_1(%arg0: i32) -> (i32, i32) {
    %c0_i32 = arith.constant 0 : i32
    %c0_i32_0 = arith.constant 0 : i32
    %c0_i32_1 = arith.constant 0 : i32
    return %c0_i32, %c0_i32_0 : i32, i32
  }
}

module attributes {stable_mosaic.version = 11 : i64} {
  func.func @_bn_affine_kernel(%arg0: i32, %arg1: memref<16x128xbf16, #tpu.memory_space<vmem>>, %arg2: memref<1x128xf32, #tpu.memory_space<vmem>>, %arg3: memref<1x128xf32, #tpu.memory_space<vmem>>, %arg4: memref<16x128xf32, #tpu.memory_space<vmem>>) attributes {dimension_semantics = [#tpu.dimension_semantics<parallel>], iteration_bounds = array<i64: 1>, scalar_prefetch = 0 : i64, scratch_operands = 0 : i64, tpu.core_type = #tpu.core_type<tc>, window_params = [{transform_indices = @transform_0, window_bounds = array<i64: 16, 128>}, {pipeline_mode = #tpu.pipeline_mode<synchronous>, transform_indices = @transform_1, window_bounds = array<i64: 1, 128>}, {pipeline_mode = #tpu.pipeline_mode<synchronous>, transform_indices = @transform_2, window_bounds = array<i64: 1, 128>}, {transform_indices = @transform_3, window_bounds = array<i64: 16, 128>}]} {
    %c0 = arith.constant 0 : index
    %c0_0 = arith.constant 0 : index
    %0 = vector.load %arg1[%c0, %c0_0] : memref<16x128xbf16, #tpu.memory_space<vmem>>, vector<16x128xbf16>
    %1 = arith.extf %0 : vector<16x128xbf16> to vector<16x128xf32>
    %c0_1 = arith.constant 0 : index
    %c0_2 = arith.constant 0 : index
    %2 = vector.load %arg2[%c0_1, %c0_2] : memref<1x128xf32, #tpu.memory_space<vmem>>, vector<1x128xf32>
    %3 = vector.broadcast %2 : vector<1x128xf32> to vector<16x128xf32>
    %4 = arith.mulf %1, %3 : vector<16x128xf32>
    %c0_3 = arith.constant 0 : index
    %c0_4 = arith.constant 0 : index
    %5 = vector.load %arg3[%c0_3, %c0_4] : memref<1x128xf32, #tpu.memory_space<vmem>>, vector<1x128xf32>
    %6 = vector.broadcast %5 : vector<1x128xf32> to vector<16x128xf32>
    %7 = arith.addf %4, %6 : vector<16x128xf32>
    %c0_5 = arith.constant 0 : index
    %c0_6 = arith.constant 0 : index
    %8 = vector.load %arg4[%c0_5, %c0_6] : memref<16x128xf32, #tpu.memory_space<vmem>>, vector<16x128xf32>
    tpu.vector_store %arg4[%c0_5, %c0_6], %7 {strides = array<i32>} : memref<16x128xf32, #tpu.memory_space<vmem>>, vector<16x128xf32>,
    return
  }
  func.func @transform_0(%arg0: i32) -> (i32, i32) {
    %c0_i32 = arith.constant 0 : i32
    %c0_i32_0 = arith.constant 0 : i32
    return %arg0, %c0_i32 : i32, i32
  }
  func.func @transform_1(%arg0: i32) -> (i32, i32) {
    %c0_i32 = arith.constant 0 : i32
    %c0_i32_0 = arith.constant 0 : i32
    %c0_i32_1 = arith.constant 0 : i32
    return %c0_i32, %c0_i32_0 : i32, i32
  }
  func.func @transform_2(%arg0: i32) -> (i32, i32) {
    %c0_i32 = arith.constant 0 : i32
    %c0_i32_0 = arith.constant 0 : i32
    %c0_i32_1 = arith.constant 0 : i32
    return %c0_i32, %c0_i32_0 : i32, i32
  }
  func.func @transform_3(%arg0: i32) -> (i32, i32) {
    %c0_i32 = arith.constant 0 : i32
    %c0_i32_0 = arith.constant 0 : i32
    return %arg0, %c0_i32 : i32, i32
  }
}

module attributes {stable_mosaic.version = 11 : i64} {
  func.func @_mlp_fwd_kernel(%arg0: i32, %arg1: i32, %arg2: memref<16x128xbf16, #tpu.memory_space<vmem>>, %arg3: memref<128x128xbf16, #tpu.memory_space<vmem>>, %arg4: memref<1x128xf32, #tpu.memory_space<vmem>>, %arg5: memref<128x128xbf16, #tpu.memory_space<vmem>>, %arg6: memref<1x128xf32, #tpu.memory_space<vmem>>, %arg7: memref<16x128xbf16, #tpu.memory_space<vmem>>, %arg8: memref<1x1x128xf32, #tpu.memory_space<vmem>>, %arg9: memref<1x1x128xf32, #tpu.memory_space<vmem>>, %arg10: memref<16x128xf32, #tpu.memory_space<vmem>>, %arg11: memref<16x128xbf16, #tpu.memory_space<vmem>>) attributes {dimension_semantics = [#tpu.dimension_semantics<parallel>, #tpu.dimension_semantics<arbitrary>], iteration_bounds = array<i64: 1, 1>, scalar_prefetch = 0 : i64, scratch_operands = 2 : i64, tpu.core_type = #tpu.core_type<tc>, window_params = [{transform_indices = @transform_0, window_bounds = array<i64: 16, 128>}, {transform_indices = @transform_1, window_bounds = array<i64: 128, 128>}, {transform_indices = @transform_2, window_bounds = array<i64: 1, 128>}, {transform_indices = @transform_3, window_bounds = array<i64: 128, 128>}, {pipeline_mode = #tpu.pipeline_mode<synchronous>, transform_indices = @transform_4, window_bounds = array<i64: 1, 128>}, {transform_indices = @transform_5, window_bounds = array<i64: 16, 128>}, {transform_indices = @transform_6, window_bounds = array<i64: 1, 1, 128>}, {transform_indices = @transform_7, window_bounds = array<i64: 1, 1, 128>}]} {
    %c0_i32 = arith.constant 0 : i32
    %0 = arith.cmpi eq, %arg1, %c0_i32 : i32
    %1 = arith.extui %0 : i1 to i32
    %c0_i32_0 = arith.constant 0 : i32
    %2 = arith.cmpi ne, %1, %c0_i32_0 : i32
    scf.if %2 {
      %cst_20 = arith.constant 0.000000e+00 : f32
      %22 = vector.broadcast %cst_20 : f32 to vector<16x128xf32>
      %c0_21 = arith.constant 0 : index
      %c0_22 = arith.constant 0 : index
      %23 = vector.load %arg10[%c0_21, %c0_22] : memref<16x128xf32, #tpu.memory_space<vmem>>, vector<16x128xf32>
      tpu.vector_store %arg10[%c0_21, %c0_22], %22 {strides = array<i32>} : memref<16x128xf32, #tpu.memory_space<vmem>>, vector<16x128xf32>,
    } else {
    }
    %c0 = arith.constant 0 : index
    %c0_1 = arith.constant 0 : index
    %3 = vector.load %arg2[%c0, %c0_1] : memref<16x128xbf16, #tpu.memory_space<vmem>>, vector<16x128xbf16>
    %c0_2 = arith.constant 0 : index
    %c0_3 = arith.constant 0 : index
    %4 = vector.load %arg3[%c0_2, %c0_3] : memref<128x128xbf16, #tpu.memory_space<vmem>>, vector<128x128xbf16>
    %cst = arith.constant dense<0.000000e+00> : vector<16x128xf32>
    %5 = tpu.matmul %3, %4, %cst {dimension_numbers = #tpu.dot_dimension_numbers<[1], [0], [0], [1], [0, 0, 1, 1], [], []>} : vector<16x128xbf16>, vector<128x128xbf16>, vector<16x128xf32> -> vector<16x128xf32>
    %c0_4 = arith.constant 0 : index
    %c0_5 = arith.constant 0 : index
    %6 = vector.load %arg4[%c0_4, %c0_5] : memref<1x128xf32, #tpu.memory_space<vmem>>, vector<1x128xf32>
    %7 = vector.broadcast %6 : vector<1x128xf32> to vector<16x128xf32>
    %8 = arith.addf %5, %7 : vector<16x128xf32>
    %cst_6 = arith.constant 0.000000e+00 : f32
    %9 = vector.broadcast %cst_6 : f32 to vector<16x128xf32>
    %10 = arith.maximumf %8, %9 : vector<16x128xf32>
    %11 = arith.truncf %10 : vector<16x128xf32> to vector<16x128xbf16>
    %c0_7 = arith.constant 0 : index
    %c0_8 = arith.constant 0 : index
    %12 = vector.load %arg11[%c0_7, %c0_8] : memref<16x128xbf16, #tpu.memory_space<vmem>>, vector<16x128xbf16>
    tpu.vector_store %arg11[%c0_7, %c0_8], %11 {strides = array<i32>} : memref<16x128xbf16, #tpu.memory_space<vmem>>, vector<16x128xbf16>,
    %c0_9 = arith.constant 0 : index
    %c0_10 = arith.constant 0 : index
    %13 = vector.load %arg10[%c0_9, %c0_10] : memref<16x128xf32, #tpu.memory_space<vmem>>, vector<16x128xf32>
    %c0_11 = arith.constant 0 : index
    %c0_12 = arith.constant 0 : index
    %14 = vector.load %arg11[%c0_11, %c0_12] : memref<16x128xbf16, #tpu.memory_space<vmem>>, vector<16x128xbf16>
    %c0_13 = arith.constant 0 : index
    %c0_14 = arith.constant 0 : index
    %15 = vector.load %arg5[%c0_13, %c0_14] : memref<128x128xbf16, #tpu.memory_space<vmem>>, vector<128x128xbf16>
    %cst_15 = arith.constant dense<0.000000e+00> : vector<16x128xf32>
    %16 = tpu.matmul %14, %15, %cst_15 {dimension_numbers = #tpu.dot_dimension_numbers<[1], [0], [0], [1], [0, 0, 1, 1], [], []>} : vector<16x128xbf16>, vector<128x128xbf16>, vector<16x128xf32> -> vector<16x128xf32>
    %17 = arith.addf %13, %16 : vector<16x128xf32>
    %c0_16 = arith.constant 0 : index
    %c0_17 = arith.constant 0 : index
    %18 = vector.load %arg10[%c0_16, %c0_17] : memref<16x128xf32, #tpu.memory_space<vmem>>, vector<16x128xf32>
    tpu.vector_store %arg10[%c0_16, %c0_17], %17 {strides = array<i32>} : memref<16x128xf32, #tpu.memory_space<vmem>>, vector<16x128xf32>,
    %c0_i32_18 = arith.constant 0 : i32
    %19 = arith.cmpi eq, %arg1, %c0_i32_18 : i32
    %20 = arith.extui %19 : i1 to i32
    %c0_i32_19 = arith.constant 0 : i32
    %21 = arith.cmpi ne, %20, %c0_i32_19 : i32
    scf.if %21 {
      %c0_20 = arith.constant 0 : index
      %c0_21 = arith.constant 0 : index
      %22 = vector.load %arg10[%c0_20, %c0_21] : memref<16x128xf32, #tpu.memory_space<vmem>>, vector<16x128xf32>
      %c0_22 = arith.constant 0 : index
      %c0_23 = arith.constant 0 : index
      %23 = vector.load %arg6[%c0_22, %c0_23] : memref<1x128xf32, #tpu.memory_space<vmem>>, vector<1x128xf32>
      %24 = vector.broadcast %23 : vector<1x128xf32> to vector<16x128xf32>
      %25 = arith.addf %22, %24 : vector<16x128xf32>
      %cst_24 = arith.constant 0.000000e+00 : f32
      %26 = vector.broadcast %cst_24 : f32 to vector<16x128xf32>
      %27 = arith.maximumf %25, %26 : vector<16x128xf32>
      %28 = arith.truncf %27 : vector<16x128xf32> to vector<16x128xbf16>
      %c0_25 = arith.constant 0 : index
      %c0_26 = arith.constant 0 : index
      %29 = vector.load %arg7[%c0_25, %c0_26] : memref<16x128xbf16, #tpu.memory_space<vmem>>, vector<16x128xbf16>
      tpu.vector_store %arg7[%c0_25, %c0_26], %28 {strides = array<i32>} : memref<16x128xbf16, #tpu.memory_space<vmem>>, vector<16x128xbf16>,
      %c0_i32_27 = arith.constant 0 : i32
      %30 = arith.cmpi slt, %arg0, %c0_i32_27 : i32
      %31 = arith.extui %30 : i1 to i32
      %c0_i32_28 = arith.constant 0 : i32
      %32 = arith.cmpi ne, %31, %c0_i32_28 : i32
      scf.if %32 {
        %cst_31 = arith.constant dense<0.000000e+00> : vector<128xf32>
        %36 = vector.multi_reduction <add>, %27, %cst_31 [0] : vector<16x128xf32> to vector<128xf32>
        %37 = vector.shape_cast %36 : vector<128xf32> to vector<1x128xf32>
        %38 = vector.shape_cast %37 : vector<1x128xf32> to vector<1x1x128xf32>
        %c0_32 = arith.constant 0 : index
        %c0_33 = arith.constant 0 : index
        %c0_34 = arith.constant 0 : index
        %39 = vector.load %arg8[%c0_32, %c0_33, %c0_34] : memref<1x1x128xf32, #tpu.memory_space<vmem>>, vector<1x1x128xf32>
        tpu.vector_store %arg8[%c0_32, %c0_33, %c0_34], %38 {strides = array<i32>} : memref<1x1x128xf32, #tpu.memory_space<vmem>>, vector<1x1x128xf32>,
        %40 = arith.mulf %27, %27 : vector<16x128xf32>
        %cst_35 = arith.constant dense<0.000000e+00> : vector<128xf32>
        %41 = vector.multi_reduction <add>, %40, %cst_35 [0] : vector<16x128xf32> to vector<128xf32>
        %42 = vector.shape_cast %41 : vector<128xf32> to vector<1x128xf32>
        %43 = vector.shape_cast %42 : vector<1x128xf32> to vector<1x1x128xf32>
        %c0_36 = arith.constant 0 : index
        %c0_37 = arith.constant 0 : index
        %c0_38 = arith.constant 0 : index
        %44 = vector.load %arg9[%c0_36, %c0_37, %c0_38] : memref<1x1x128xf32, #tpu.memory_space<vmem>>, vector<1x1x128xf32>
        tpu.vector_store %arg9[%c0_36, %c0_37, %c0_38], %43 {strides = array<i32>} : memref<1x1x128xf32, #tpu.memory_space<vmem>>, vector<1x1x128xf32>,
      } else {
      }
      %c0_i32_29 = arith.constant 0 : i32
      %33 = arith.cmpi eq, %arg0, %c0_i32_29 : i32
      %34 = arith.extui %33 : i1 to i32
      %c0_i32_30 = arith.constant 0 : i32
      %35 = arith.cmpi ne, %34, %c0_i32_30 : i32
      scf.if %35 {
        %36 = tpu.iota {dimensions = array<i32: 0>} : vector<16x1xi32>
        %c16_i32 = arith.constant 16 : i32
        %37 = arith.muli %arg0, %c16_i32 : i32
        %38 = vector.broadcast %37 : i32 to vector<16x1xi32>
        %39 = arith.addi %36, %38 : vector<16x1xi32>
        %c16_i32_31 = arith.constant 16 : i32
        %40 = vector.broadcast %c16_i32_31 : i32 to vector<16x1xi32>
        %41 = arith.cmpi slt, %39, %40 : vector<16x1xi32>
        %42 = arith.extui %41 : vector<16x1xi1> to vector<16x1xi32>
        %43 = arith.sitofp %42 : vector<16x1xi32> to vector<16x1xf32>
        %44 = vector.broadcast %43 : vector<16x1xf32> to vector<16x128xf32>
        %45 = arith.mulf %27, %44 : vector<16x128xf32>
        %cst_32 = arith.constant dense<0.000000e+00> : vector<128xf32>
        %46 = vector.multi_reduction <add>, %45, %cst_32 [0] : vector<16x128xf32> to vector<128xf32>
        %47 = vector.shape_cast %46 : vector<128xf32> to vector<1x128xf32>
        %48 = vector.shape_cast %47 : vector<1x128xf32> to vector<1x1x128xf32>
        %c0_33 = arith.constant 0 : index
        %c0_34 = arith.constant 0 : index
        %c0_35 = arith.constant 0 : index
        %49 = vector.load %arg8[%c0_33, %c0_34, %c0_35] : memref<1x1x128xf32, #tpu.memory_space<vmem>>, vector<1x1x128xf32>
        tpu.vector_store %arg8[%c0_33, %c0_34, %c0_35], %48 {strides = array<i32>} : memref<1x1x128xf32, #tpu.memory_space<vmem>>, vector<1x1x128xf32>,
        %50 = arith.mulf %45, %27 : vector<16x128xf32>
        %cst_36 = arith.constant dense<0.000000e+00> : vector<128xf32>
        %51 = vector.multi_reduction <add>, %50, %cst_36 [0] : vector<16x128xf32> to vector<128xf32>
        %52 = vector.shape_cast %51 : vector<128xf32> to vector<1x128xf32>
        %53 = vector.shape_cast %52 : vector<1x128xf32> to vector<1x1x128xf32>
        %c0_37 = arith.constant 0 : index
        %c0_38 = arith.constant 0 : index
        %c0_39 = arith.constant 0 : index
        %54 = vector.load %arg9[%c0_37, %c0_38, %c0_39] : memref<1x1x128xf32, #tpu.memory_space<vmem>>, vector<1x1x128xf32>
        tpu.vector_store %arg9[%c0_37, %c0_38, %c0_39], %53 {strides = array<i32>} : memref<1x1x128xf32, #tpu.memory_space<vmem>>, vector<1x1x128xf32>,
      } else {
      }
    } else {
    }
    return
  }
  func.func @transform_0(%arg0: i32, %arg1: i32) -> (i32, i32) {
    %c0_i32 = arith.constant 0 : i32
    %c0_i32_0 = arith.constant 0 : i32
    return %arg0, %c0_i32 : i32, i32
  }
  func.func @transform_1(%arg0: i32, %arg1: i32) -> (i32, i32) {
    %c0_i32 = arith.constant 0 : i32
    %c0_i32_0 = arith.constant 0 : i32
    return %c0_i32, %arg1 : i32, i32
  }
  func.func @transform_2(%arg0: i32, %arg1: i32) -> (i32, i32) {
    %c0_i32 = arith.constant 0 : i32
    %c0_i32_0 = arith.constant 0 : i32
    return %c0_i32, %arg1 : i32, i32
  }
  func.func @transform_3(%arg0: i32, %arg1: i32) -> (i32, i32) {
    %c0_i32 = arith.constant 0 : i32
    %c0_i32_0 = arith.constant 0 : i32
    return %arg1, %c0_i32 : i32, i32
  }
  func.func @transform_4(%arg0: i32, %arg1: i32) -> (i32, i32) {
    %c0_i32 = arith.constant 0 : i32
    %c0_i32_0 = arith.constant 0 : i32
    %c0_i32_1 = arith.constant 0 : i32
    return %c0_i32, %c0_i32_0 : i32, i32
  }
  func.func @transform_5(%arg0: i32, %arg1: i32) -> (i32, i32) {
    %c0_i32 = arith.constant 0 : i32
    %c0_i32_0 = arith.constant 0 : i32
    return %arg0, %c0_i32 : i32, i32
  }
  func.func @transform_6(%arg0: i32, %arg1: i32) -> (i32, i32, i32) {
    %c0_i32 = arith.constant 0 : i32
    %c0_i32_0 = arith.constant 0 : i32
    %c0_i32_1 = arith.constant 0 : i32
    return %arg0, %c0_i32, %c0_i32_0 : i32, i32, i32
  }
  func.func @transform_7(%arg0: i32, %arg1: i32) -> (i32, i32, i32) {
    %c0_i32 = arith.constant 0 : i32
    %c0_i32_0 = arith.constant 0 : i32
    %c0_i32_1 = arith.constant 0 : i32
    return %arg0, %c0_i32, %c0_i32_0 : i32, i32, i32
  }
}

</mosaic_0001>

<bundles_post_ra>
// kernel: tpu_custom_call.1
= control target key start
LH: loop header
LB: loop body
LE: loop exit
PB: predicated region body
PF: predicated region fallthrough
CT: control target
= control target key end

     0   :  { %6 = vsyncpa [#allocation3], 0  ;;  %s124_s0 = inlined_call_operand.hbm [shape: f32[8,128], index: 0, kind: input, shape index: {}]   ;;  %s125_s1 = inlined_call_operand.hbm [shape: f32[8,128], index: 1, kind: output, shape index: {}]  }
   0x1   :  { %7 = vsyncpa [#allocation4], 0  ;;  %s88_s6 = smov [#allocation2]   ;;  %s40_s10 = scalar_lea.hbm %s124_s0, 128 }
   0x2   :  { %s14_s7 = sshll.u32 %s88_s6, 4  ;;  %p41_p0 = scmp.ne.s32.totalorder %s124_s0, %s40_s10  ;;  %s15_s7 = int_to_ptr.vmem [resolvable:$true] %s14_s7 }
   0x3   :  { %p44_p1 = scmp.lt.u32.totalorder %s40_s10, %s124_s0 }
   0x5   :  { %p46_p2 = pnand %p44_p1, %p41_p0 }
   0x7   :  { %49 = shalt.err (!%p46_p2)
}
   0x8   :  { %s50_s15 = scalar_lea.vmem %s15_s7, 128  ;;  %p55_p4 = scmp.lt.s32.totalorder %s15_s7, %s15_s7 }
   0x9   :  { %p51_p3 = scmp.ne.s32.totalorder %s15_s7, %s50_s15  ;;  %p56_p5 = scmp.lt.s32.totalorder %s50_s15, %s50_s15 }
   0xb   :  { %p57_p6 = por %p56_p5, %p55_p4 }
   0xd   :  { %p58_p7 = pnand %p57_p6, %p51_p3 }
   0xf   :  { %61 = shalt.err (!%p58_p7)
}
  0x10   :  { %17 = dma.hbm_to_vmem [thread:$0]  %s124_s0, 128, %s15_s7, [#allocation3]  }
  0x11   :  { %84 = dma.done.wait [#allocation3], 128  }
  0x12   :  { %85 = vsyncadd [#allocation3], 4294967168  ;;  %s89_s18 = smov [#allocation5]   ;;  %v21_v0 = vld [vmem:[#allocation2] sm:$0xff] }
  0x13   :  { %s29_s19 = sshll.u32 %s89_s18, 4  ;;  %22 = vst [vmem:[#allocation5] sm:$0xff] %v21_v0  ;;  %s30_s19 = int_to_ptr.vmem [resolvable:$true] %s29_s19 }
  0x14   :  { %s62_s20 = scalar_lea.vmem %s30_s19, 128  ;;  %p67_p9 = scmp.lt.s32.totalorder %s30_s19, %s30_s19 }
  0x15   :  { %p63_p8 = scmp.ne.s32.totalorder %s30_s19, %s62_s20  ;;  %p68_p10 = scmp.lt.s32.totalorder %s62_s20, %s62_s20 }
  0x17   :  { %p69_p11 = por %p68_p10, %p67_p9 }
  0x19   :  { %p70_p12 = pnand %p69_p11, %p63_p8 }
  0x1b   :  { %73 = shalt.err (!%p70_p12)
}
  0x1c   :  { %s74_s23 = scalar_lea.hbm %s125_s1, 128 }
  0x1d   :  { %p75_p13 = scmp.ne.s32.totalorder %s125_s1, %s74_s23  ;;  %p78_p0 = scmp.lt.u32.totalorder %s74_s23, %s125_s1 }
  0x1f   :  { %p80_p1 = pnand %p78_p0, %p75_p13 }
  0x21   :  { %83 = shalt.err (!%p80_p1)
}
  0x22   :  { %32 = dma.vmem_to_hbm [thread:$0]  %s30_s19, 128, %s125_s1, [#allocation4]  }
  0x23   :  { %86 = dma.done.wait [#allocation4], 128  }
  0x24   :  { %87 = vsyncadd [#allocation4], 4294967168 }
  0x25   :  { %36 = vsyncpa [#allocation3], 1 }
  0x26   :  { %37 = vsyncpa [#allocation4], 1 }

// kernel: _mlp_forward_impl.3
= control target key start
LH: loop header
LB: loop body
LE: loop exit
PB: predicated region body
PF: predicated region fallthrough
CT: control target
= control target key end

     0   :  { %s83_s0 = inlined_call_operand.vmem [shape: bf16[16,128], index: 0, kind: input, shape index: {}]   ;;  %s84_s1 = inlined_call_operand.vmem [shape: f32[1,128], index: 1, kind: input, shape index: {}]   ;;  %s85_s2 = inlined_call_operand.vmem [shape: f32[1,128], index: 2, kind: input, shape index: {}]   ;;  %s86_s3 = inlined_call_operand.vmem [shape: f32[16,128], index: 3, kind: output, shape index: {}]  }
   0x1   :  { %v45_v0 = vld [vmem:[%s83_s0] sm:$0xff]  }
   0x2   :  { %v42_v1 = vld [vmem:[%s84_s1] ss:$0 sm:$0xff]  ;;  %v46_v2 = vunpack.c.l.bf16 %v45_v0  ;;  %v47_v3 = vunpack.c.h.bf16 %v45_v0 }
   0x3   :  { %v43_v4 = vld [vmem:[%s85_s2] ss:$0 sm:$0xff] }
   0x4   :  { %v25_v5 = vmul.f32 %v46_v2, %v42_v1  ;;  %v26_v6 = vmul.f32 %v47_v3, %v42_v1 }
   0x6   :  { %v34_v7 = vadd.f32 %v43_v4, %v25_v5  ;;  %v35_v8 = vadd.f32 %v43_v4, %v26_v6 }
   0x8   :  { %36 = vst [vmem:[%s86_s3] sm:$0xff] %v34_v7  ;;  %37 = vst [vmem:[%s86_s3 + $0x8] sm:$0xff] %v35_v8 }

// kernel: _mlp_forward_impl.2
= control target key start
LH: loop header
LB: loop body
LE: loop exit
PB: predicated region body
PF: predicated region fallthrough
CT: control target
= control target key end

     0   :  { %v468_v0 = vmov 0.0   ;;  %vm469_vm0 = vmmov 0   ;;  %s576_s1 = inlined_call_operand.vmem [shape: bf16[128,128], index: 1, kind: input, shape index: {}]   ;;  %s577_s3 = inlined_call_operand.vmem [shape: bf16[128,128], index: 3, kind: input, shape index: {}]   ;;  %s578_s0 = inlined_call_operand.vmem [shape: bf16[16,128], index: 0, kind: input, shape index: {}]   ;;  %s579_s2 = inlined_call_operand.vmem [shape: f32[1,128], index: 2, kind: input, shape index: {}]   ;;  %s580_s4 = inlined_call_operand.vmem [shape: f32[1,128], index: 4, kind: input, shape index: {}]   ;;  %s581_s5 = inlined_call_operand.vmem [shape: bf16[16,128], index: 5, kind: output, shape index: {0}]   ;;  %s582_s6 = inlined_call_operand.vmem [shape: f32[1,1,128], index: 6, kind: output, shape index: {1}]   ;;  %s583_s7 = inlined_call_operand.vmem [shape: f32[1,1,128], index: 7, kind: output, shape index: {2}]  }
   0x1   :  { %409 = vmatprep.subr.bf16.mxu0 %v468_v0  ;;  %v451_v1 = vld [vmem:[%s576_s1] sm:$0xff]   ;;  %425 = vmatprep.mubr.msk.bf16.mxu0 %vm469_vm0, %v468_v0  ;;  %v452_v2 = vld [vmem:[%s576_s1 + $0x8] sm:$0xff]   ;;  %v453_v3 = vld [vmem:[%s576_s1 + $0x10] sm:$0xff]  }
   0x2   :  { %429 = vmatprep.subr.bf16.mxu1 %v468_v0  ;;  %445 = vmatprep.mubr.msk.bf16.mxu1 %vm469_vm0, %v468_v0  ;;  %v460_v4 = vld [vmem:[%s577_s3] sm:$0xff]   ;;  %v454_v5 = vld [vmem:[%s576_s1 + $0x18] sm:$0xff]   ;;  %v461_v6 = vld [vmem:[%s577_s3 + $0x8] sm:$0xff]  }
   0x3   :  { %410 = vmatpush3.bf16.msra.mxu0 %v451_v1  ;;  %430 = vmatpush3.bf16.msra.mxu1 %v460_v4  ;;  %v455_v7 = vld [vmem:[%s576_s1 + $0x20] sm:$0xff]   ;;  %v462_v8 = vld [vmem:[%s577_s3 + $0x10] sm:$0xff]   ;;  %v456_v9 = vld [vmem:[%s576_s1 + $0x28] sm:$0xff]  }
   0x4   :  { %411 = vmatprep.subr.bf16.mxu0 %v468_v0  ;;  %431 = vmatprep.subr.bf16.mxu1 %v468_v0  ;;  %v463_v10 = vld [vmem:[%s577_s3 + $0x18] sm:$0xff]   ;;  %v457_v11 = vld [vmem:[%s576_s1 + $0x30] sm:$0xff]   ;;  %v464_v12 = vld [vmem:[%s577_s3 + $0x20] sm:$0xff]  }
   0x5   :  { %v458_v13 = vld [vmem:[%s576_s1 + $0x38] sm:$0xff]   ;;  %v465_v14 = vld [vmem:[%s577_s3 + $0x28] sm:$0xff]   ;;  %v459_v15 = vld [vmem:[%s578_s0] sm:$0xff]  }
   0x6   :  { %v466_v16 = vld [vmem:[%s577_s3 + $0x30] sm:$0xff]   ;;  %v467_v17 = vld [vmem:[%s577_s3 + $0x38] sm:$0xff]   ;;  %v363_v18 = vld [vmem:[%s579_s2] ss:$0 sm:$0xff] }
   0x7   :  { %412 = vmatpush3.bf16.msra.mxu0 %v452_v2  ;;  %432 = vmatpush3.bf16.msra.mxu1 %v461_v6  ;;  %v381_v28 = vld [vmem:[%s580_s4] ss:$0 sm:$0xff] }
   0x8   :  { %413 = vmatprep.subr.bf16.mxu0 %v468_v0  ;;  %433 = vmatprep.subr.bf16.mxu1 %v468_v0 }
   0xb   :  { %414 = vmatpush3.bf16.msra.mxu0 %v453_v3  ;;  %434 = vmatpush3.bf16.msra.mxu1 %v462_v8 }
   0xc   :  { %415 = vmatprep.subr.bf16.mxu0 %v468_v0  ;;  %435 = vmatprep.subr.bf16.mxu1 %v468_v0 }
   0xf   :  { %416 = vmatpush3.bf16.msra.mxu0 %v454_v5  ;;  %436 = vmatpush3.bf16.msra.mxu1 %v463_v10 }
  0x10   :  { %417 = vmatprep.subr.bf16.mxu0 %v468_v0  ;;  %437 = vmatprep.subr.bf16.mxu1 %v468_v0 }
  0x13   :  { %418 = vmatpush3.bf16.msra.mxu0 %v455_v7  ;;  %438 = vmatpush3.bf16.msra.mxu1 %v464_v12 }
  0x14   :  { %419 = vmatprep.subr.bf16.mxu0 %v468_v0  ;;  %439 = vmatprep.subr.bf16.mxu1 %v468_v0 }
  0x17   :  { %420 = vmatpush3.bf16.msra.mxu0 %v456_v9  ;;  %440 = vmatpush3.bf16.msra.mxu1 %v465_v14 }
  0x18   :  { %421 = vmatprep.subr.bf16.mxu0 %v468_v0  ;;  %441 = vmatprep.subr.bf16.mxu1 %v468_v0 }
  0x1b   :  { %422 = vmatpush3.bf16.msra.mxu0 %v457_v11  ;;  %442 = vmatpush3.bf16.msra.mxu1 %v466_v16 }
  0x1c   :  { %423 = vmatprep.subr.bf16.mxu0 %v468_v0  ;;  %443 = vmatprep.subr.bf16.mxu1 %v468_v0 }
  0x1f   :  { %424 = vmatpush3.bf16.msra.mxu0 %v458_v13  ;;  %444 = vmatpush3.bf16.msra.mxu1 %v467_v17 }
  0x22   :  { %426 = vmatmul.mubr.bf16.vlgmr.msra.gmra.mrb[0].mxu0 %v459_v15 }
  0xf5   :  { %v143_v19 = vpop.f32.mrb[0].mxu0 }
  0xf6   :  { %v144_v20 = vadd.f32 %v363_v18, %v143_v19  ;;  %v427_v21 = vpop.f32.mrb[1].mxu0 }
  0xf7   :  { %v146_v22 = vpop.f32.mrb[2].mxu0 }
  0xf8   :  { %v147_v23 = vadd.f32 %v363_v18, %v146_v22  ;;  %v428_v24 = vpop.f32.mrb[3].mxu0  ;;  %v150_v25 = vmax.f32 %v144_v20, 0.0 }
  0xfa   :  { %v151_v26 = vmax.f32 %v147_v23, 0.0 }
  0xfc   :  { %v152_v27 = vpack.c.bf16 %v151_v26, %v150_v25 }
  0xfe   :  { %446 = vmatmul.mubr.bf16.vlgmr.msra.gmra.mrb[0].mxu1 %v152_v27 }
 0x1d1   :  { %v255_v29 = vpop.f32.mrb[0].mxu1 }
 0x1d2   :  { %v278_v30 = vadd.f32 %v381_v28, %v255_v29  ;;  %v447_v31 = vpop.f32.mrb[1].mxu1 }
 0x1d3   :  { %v258_v32 = vpop.f32.mrb[2].mxu1 }
 0x1d4   :  { %v280_v33 = vmax.f32 %v278_v30, 0.0  ;;  %v279_v34 = vadd.f32 %v381_v28, %v258_v32  ;;  %v448_v35 = vpop.f32.mrb[3].mxu1 }
 0x1d6   :  { %v281_v36 = vmax.f32 %v279_v34, 0.0  ;;  %v341_v37 = vmul.f32 %v280_v33, %v280_v33 }
 0x1d8   :  { %v389_v38 = vpack.c.bf16 %v281_v36, %v280_v33  ;;  %v333_v39 = vadd.f32 %v281_v36, %v280_v33  ;;  %v342_v40 = vmul.f32 %v281_v36, %v281_v36 }
 0x1da   :  { %390 = vst [vmem:[%s581_s5] sm:$0xff] %v389_v38   ;;  %v334_v41 = vrot.slane %v333_v39, 4  ;;  %v343_v42 = vadd.f32 %v342_v40, %v341_v37 }
 0x1dc   :  { %v335_v43 = vadd.f32 %v334_v41, %v333_v39  ;;  %v344_v44 = vrot.slane %v343_v42, 4 }
 0x1de   :  { %v336_v45 = vrot.slane %v335_v43, 2  ;;  %v345_v46 = vadd.f32 %v344_v44, %v343_v42 }
 0x1e0   :  { %v337_v47 = vadd.f32 %v336_v45, %v335_v43  ;;  %v346_v48 = vrot.slane %v345_v46, 2 }
 0x1e2   :  { %v338_v49 = vrot.slane %v337_v47, 1  ;;  %v347_v50 = vadd.f32 %v346_v48, %v345_v46 }
 0x1e4   :  { %v339_v51 = vadd.f32 %v338_v49, %v337_v47  ;;  %v348_v52 = vrot.slane %v347_v50, 1 }
 0x1e6   :  { %340 = vst [vmem:[%s582_s6] sm:$0x1] %v339_v51  ;;  %v349_v53 = vadd.f32 %v348_v52, %v347_v50 }
 0x1e8   :  { %350 = vst [vmem:[%s583_s7] sm:$0x1] %v349_v53 }

</bundles_post_ra>
